<compile_context>
chip_gen: v5e
topology: v5e:2x2
jax: 0.10.0
libtpu: 0.0.40
codegen_flags: <defaults>
</compile_context>

<pallas_src>
import functools

import jax
import jax.numpy as jnp
from jax.experimental import pallas as pl
from jax.experimental.pallas import tpu as pltpu


_LANE = 128
_SUBLANE = 8
_NSPLIT = 2        # per-split partial accumulators (v7x megacore friendly)
_MAX_TM = 512


def _round_up(a, b):
    return (a + b - 1) // b * b


# --------------------------------------------------------------------------------------
# Pass 1: stats only.  y is computed on the MXU per tile and immediately reduced to
# per-channel sum / sum-of-squares; nothing M-sized is written to HBM.
# --------------------------------------------------------------------------------------
def conv_stats_kernel(x_ref, w_ref, stats_ref):
    i = pl.program_id(1)

    y = jnp.dot(x_ref[...], w_ref[...], preferred_element_type=jnp.float32)

    @pl.when(i == 0)
    def _():
        stats_ref[...] = jnp.zeros_like(stats_ref)

    s = jnp.sum(y, axis=0, keepdims=True)        # (1, Cout_p)
    q = jnp.sum(y * y, axis=0, keepdims=True)    # (1, Cout_p)
    stats_ref[...] += jnp.concatenate([s, q], axis=0)[None]   # (1, 2, Cout_p)


# --------------------------------------------------------------------------------------
# Pass 2: fused conv + BN affine:  out = (x @ w) * scale + shift   (scale/shift f32).
# --------------------------------------------------------------------------------------
def conv_bn_kernel(x_ref, w_ref, scale_ref, shift_ref, o_ref):
    y = jnp.dot(x_ref[...], w_ref[...], preferred_element_type=jnp.float32)
    o_ref[...] = y * scale_ref[...] + shift_ref[...]


@functools.partial(jax.jit, static_argnames=("stride", "eps"))
def conv_projection_bypass(x, weight, gamma, beta, *, stride=(1, 2, 2), eps=1e-5):
    """x: (N, Cin, D, H, W) f32; weight: (Cout, Cin) (from Conv3d (Cout,Cin,1,1,1)).

    Matches nn.Conv3d(k=1, stride, bias=False) followed by nn.BatchNorm3d in training
    mode.  Returns (N, Cout, D_out, H_out, W_out) f32.
    """
    N, Cin, D, H, W = x.shape
    Cout = weight.shape[0]
    sd, sh, sw = stride

    # Strided 1x1x1 conv == spatial subsample, then a per-voxel channel matmul.
    # TODO(synk): fold the subsample + NCDHW->channels-last layout change (and the final
    # transpose back) into the BlockSpec index_maps / channels-last IO to avoid the
    # XLA-side layout passes on this mem-bound op.
    xs = x[:, :, ::sd, ::sh, ::sw]                                     # (N, Cin, D', H', W')
    Dp, Hp, Wp = xs.shape[2], xs.shape[3], xs.shape[4]
    x_flat = jnp.transpose(xs, (0, 2, 3, 4, 1)).reshape(-1, Cin)       # (M, Cin)
    M = x_flat.shape[0]

    # Lane-dense output channels (multiple of 128); zero-padded channels stay 0.
    Cout_p = _round_up(Cout, _LANE)

    # Fixed sublane-aligned tile; zero-pad M up to a multiple of NSPLIT * tm.
    tm = min(_MAX_TM, max(_SUBLANE, _round_up(-(-M // _NSPLIT), _SUBLANE)))
    Mp = _round_up(M, _NSPLIT * tm)
    blocks_per_split = Mp // (_NSPLIT * tm)

    # bf16 inputs for the MXU; halves the dominant HBM read of x.
    x_p = jnp.pad(x_flat, ((0, Mp - M), (0, 0))).astype(jnp.bfloat16)   # (Mp, Cin)
    w_p = jnp.zeros((Cin, Cout_p), jnp.bfloat16).at[:, :Cout].set(
        jnp.transpose(weight).astype(jnp.bfloat16))                     # (Cin, Cout_p)

    # ---- Pass 1: per-channel sum / sum-of-squares (per-split partial accumulators). ----
    stats = pl.pallas_call(
        conv_stats_kernel,
        out_shape=jax.ShapeDtypeStruct((_NSPLIT, 2, Cout_p), jnp.float32),
        grid_spec=pltpu.PrefetchScalarGridSpec(
            num_scalar_prefetch=0,
            grid=(_NSPLIT, blocks_per_split),
            in_specs=[
                pl.BlockSpec((tm, Cin), lambda c, i: (c * blocks_per_split + i, 0)),
                pl.BlockSpec((Cin, Cout_p), lambda c, i: (0, 0)),
            ],
            out_specs=pl.BlockSpec((1, 2, Cout_p), lambda c, i: (c, 0, 0)),
        ),
        compiler_params=pltpu.CompilerParams(
            dimension_semantics=("parallel", "arbitrary")),
    )(x_p, w_p)

    # Tiny per-channel glue in f32: derive BN scale/shift from the accumulated stats.
    totals = jnp.sum(stats, axis=0)                                    # (2, Cout_p)
    mean = totals[0:1] / M                                             # (1, Cout_p)
    var = jnp.maximum(totals[1:2] / M - mean * mean, 0.0)              # biased (training BN)
    invstd = 1.0 / jnp.sqrt(var + eps)
    gamma_p = jnp.zeros((1, Cout_p), jnp.float32).at[0, :Cout].set(gamma.astype(jnp.float32))
    beta_p = jnp.zeros((1, Cout_p), jnp.float32).at[0, :Cout].set(beta.astype(jnp.float32))
    scale = gamma_p * invstd                                           # (1, Cout_p)
    shift = beta_p - mean * scale                                      # (1, Cout_p)

    # ---- Pass 2: fused conv + BN affine (lane-dense output blocks). ----
    out_flat = pl.pallas_call(
        conv_bn_kernel,
        out_shape=jax.ShapeDtypeStruct((Mp, Cout_p), jnp.float32),
        grid_spec=pltpu.PrefetchScalarGridSpec(
            num_scalar_prefetch=0,
            grid=(Mp // tm,),
            in_specs=[
                pl.BlockSpec((tm, Cin), lambda i: (i, 0)),
                pl.BlockSpec((Cin, Cout_p), lambda i: (0, 0)),
                pl.BlockSpec((1, Cout_p), lambda i: (0, 0)),
                pl.BlockSpec((1, Cout_p), lambda i: (0, 0)),
            ],
            out_specs=pl.BlockSpec((tm, Cout_p), lambda i: (i, 0)),
        ),
        compiler_params=pltpu.CompilerParams(
            dimension_semantics=("parallel",)),
    )(x_p, w_p, scale, shift)

    out = out_flat[:M, :Cout].reshape(N, Dp, Hp, Wp, Cout)
    return jnp.transpose(out, (0, 4, 1, 2, 3))                         # back to NCDHW


def _reference(x, weight, gamma, beta, stride=(1, 2, 2), eps=1e-5):
    # Pure-JAX reference for validation (f32).
    sd, sh, sw = stride
    xs = x[:, :, ::sd, ::sh, ::sw]
    y = jnp.einsum("ncdhw,oc->nodhw", xs, weight)
    mean = jnp.mean(y, axis=(0, 2, 3, 4), keepdims=True)
    var = jnp.mean((y - mean) ** 2, axis=(0, 2, 3, 4), keepdims=True)
    yhat = (y - mean) / jnp.sqrt(var + eps)
    return yhat * gamma.reshape(1, -1, 1, 1, 1) + beta.reshape(1, -1, 1, 1, 1)


if __name__ == "__main__":
    key = jax.random.PRNGKey(0)
    k_x, k_w = jax.random.split(key)

    N, Cin, D, H, W = 2, 4, 4, 16, 16
    Cout = 8
    stride = (1, 2, 2)

    x = jax.random.normal(k_x, (N, Cin, D, H, W), dtype=jnp.float32)

    # Deterministic parameter init (Conv3d-style bound; BN defaults gamma=1, beta=0).
    fan_in = Cin  # kernel_size = 1x1x1
    bound = 1.0 / jnp.sqrt(fan_in)
    weight = jax.random.uniform(k_w, (Cout, Cin), minval=-bound, maxval=bound,
                                dtype=jnp.float32)
    gamma = jnp.ones((Cout,), dtype=jnp.float32)
    beta = jnp.zeros((Cout,), dtype=jnp.float32)

    out = conv_projection_bypass(x, weight, gamma, beta, stride=stride)
    out = jax.block_until_ready(out)
    assert out.shape == (N, Cout, D, H // 2, W // 2), out.shape

    # Tight check against a reference using the same bf16 input rounding as the kernel.
    ref_bf16 = _reference(
        x.astype(jnp.bfloat16).astype(jnp.float32),
        weight.astype(jnp.bfloat16).astype(jnp.float32),
        gamma, beta, stride=stride)
    assert jnp.allclose(out, ref_bf16, atol=5e-3, rtol=5e-3), \
        float(jnp.max(jnp.abs(out - ref_bf16)))

    # Loose check against the exact f32 reference (bf16 MXU inputs).
    ref_f32 = _reference(x, weight, gamma, beta, stride=stride)
    assert jnp.allclose(out, ref_f32, atol=3e-2, rtol=3e-2), \
        float(jnp.max(jnp.abs(out - ref_f32)))

    print("KERNEL_OK")
</pallas_src>

<mosaic_0001>
module attributes {stable_mosaic.version = 11 : i64} {
  func.func @conv_stats_kernel(%arg0: i32, %arg1: i32, %arg2: memref<256x4xbf16, #tpu.memory_space<vmem>>, %arg3: memref<4x128xbf16, #tpu.memory_space<vmem>>, %arg4: memref<1x2x128xf32, #tpu.memory_space<vmem>>) attributes {dimension_semantics = [#tpu.dimension_semantics<parallel>, #tpu.dimension_semantics<arbitrary>], iteration_bounds = array<i64: 2, 1>, scalar_prefetch = 0 : i64, scratch_operands = 0 : i64, tpu.core_type = #tpu.core_type<tc>, window_params = [{transform_indices = @transform_0, window_bounds = array<i64: 256, 4>}, {pipeline_mode = #tpu.pipeline_mode<synchronous>, transform_indices = @transform_1, window_bounds = array<i64: 4, 128>}, {transform_indices = @transform_2, window_bounds = array<i64: 1, 2, 128>}]} {
    %c0 = arith.constant 0 : index
    %c0_0 = arith.constant 0 : index
    %0 = vector.load %arg2[%c0, %c0_0] : memref<256x4xbf16, #tpu.memory_space<vmem>>, vector<256x4xbf16>
    %c0_1 = arith.constant 0 : index
    %c0_2 = arith.constant 0 : index
    %1 = vector.load %arg3[%c0_1, %c0_2] : memref<4x128xbf16, #tpu.memory_space<vmem>>, vector<4x128xbf16>
    %cst = arith.constant dense<0.000000e+00> : vector<256x128xf32>
    %2 = tpu.matmul %0, %1, %cst {dimension_numbers = #tpu.dot_dimension_numbers<[1], [0], [0], [1], [0, 0, 1, 1], [], []>} : vector<256x4xbf16>, vector<4x128xbf16>, vector<256x128xf32> -> vector<256x128xf32>
    %c0_i32 = arith.constant 0 : i32
    %3 = arith.cmpi eq, %arg1, %c0_i32 : i32
    %4 = arith.extui %3 : i1 to i32
    %c0_i32_3 = arith.constant 0 : i32
    %5 = arith.cmpi ne, %4, %c0_i32_3 : i32
    scf.if %5 {
      %cst_12 = arith.constant 0.000000e+00 : f32
      %16 = vector.broadcast %cst_12 : f32 to vector<1x2x128xf32>
      %c0_13 = arith.constant 0 : index
      %c0_14 = arith.constant 0 : index
      %c0_15 = arith.constant 0 : index
      %17 = vector.load %arg4[%c0_13, %c0_14, %c0_15] : memref<1x2x128xf32, #tpu.memory_space<vmem>>, vector<1x2x128xf32>
      tpu.vector_store %arg4[%c0_13, %c0_14, %c0_15], %16 {strides = array<i32>} : memref<1x2x128xf32, #tpu.memory_space<vmem>>, vector<1x2x128xf32>,
    } else {
    }
    %cst_4 = arith.constant dense<0.000000e+00> : vector<128xf32>
    %6 = vector.multi_reduction <add>, %2, %cst_4 [0] : vector<256x128xf32> to vector<128xf32>
    %7 = vector.shape_cast %6 : vector<128xf32> to vector<1x128xf32>
    %8 = arith.mulf %2, %2 : vector<256x128xf32>
    %cst_5 = arith.constant dense<0.000000e+00> : vector<128xf32>
    %9 = vector.multi_reduction <add>, %8, %cst_5 [0] : vector<256x128xf32> to vector<128xf32>
    %10 = vector.shape_cast %9 : vector<128xf32> to vector<1x128xf32>
    %c0_6 = arith.constant 0 : index
    %c0_7 = arith.constant 0 : index
    %c0_8 = arith.constant 0 : index
    %11 = vector.load %arg4[%c0_6, %c0_7, %c0_8] : memref<1x2x128xf32, #tpu.memory_space<vmem>>, vector<1x2x128xf32>
    %12 = tpu.concatenate %7, %10 in 0 : vector<1x128xf32>, vector<1x128xf32> -> vector<2x128xf32>
    %13 = vector.shape_cast %12 : vector<2x128xf32> to vector<1x2x128xf32>
    %14 = arith.addf %11, %13 : vector<1x2x128xf32>
    %c0_9 = arith.constant 0 : index
    %c0_10 = arith.constant 0 : index
    %c0_11 = arith.constant 0 : index
    %15 = vector.load %arg4[%c0_9, %c0_10, %c0_11] : memref<1x2x128xf32, #tpu.memory_space<vmem>>, vector<1x2x128xf32>
    tpu.vector_store %arg4[%c0_9, %c0_10, %c0_11], %14 {strides = array<i32>} : memref<1x2x128xf32, #tpu.memory_space<vmem>>, vector<1x2x128xf32>,
    return
  }
  func.func @transform_0(%arg0: i32, %arg1: i32) -> (i32, i32) {
    %c1_i32 = arith.constant 1 : i32
    %0 = arith.muli %arg0, %c1_i32 : i32
    %1 = arith.addi %0, %arg1 : i32
    %c0_i32 = arith.constant 0 : i32
    %c0_i32_0 = arith.constant 0 : i32
    return %1, %c0_i32 : i32, i32
  }
  func.func @transform_1(%arg0: i32, %arg1: i32) -> (i32, i32) {
    %c0_i32 = arith.constant 0 : i32
    %c0_i32_0 = arith.constant 0 : i32
    %c0_i32_1 = arith.constant 0 : i32
    return %c0_i32, %c0_i32_0 : i32, i32
  }
  func.func @transform_2(%arg0: i32, %arg1: i32) -> (i32, i32, i32) {
    %c0_i32 = arith.constant 0 : i32
    %c0_i32_0 = arith.constant 0 : i32
    %c0_i32_1 = arith.constant 0 : i32
    return %arg0, %c0_i32, %c0_i32_0 : i32, i32, i32
  }
}

module attributes {stable_mosaic.version = 11 : i64} {
  func.func @conv_bn_kernel(%arg0: i32, %arg1: memref<256x4xbf16, #tpu.memory_space<vmem>>, %arg2: memref<4x128xbf16, #tpu.memory_space<vmem>>, %arg3: memref<1x128xf32, #tpu.memory_space<vmem>>, %arg4: memref<1x128xf32, #tpu.memory_space<vmem>>, %arg5: memref<256x128xf32, #tpu.memory_space<vmem>>) attributes {dimension_semantics = [#tpu.dimension_semantics<parallel>], iteration_bounds = array<i64: 2>, scalar_prefetch = 0 : i64, scratch_operands = 0 : i64, tpu.core_type = #tpu.core_type<tc>, window_params = [{transform_indices = @transform_0, window_bounds = array<i64: 256, 4>}, {pipeline_mode = #tpu.pipeline_mode<synchronous>, transform_indices = @transform_1, window_bounds = array<i64: 4, 128>}, {pipeline_mode = #tpu.pipeline_mode<synchronous>, transform_indices = @transform_2, window_bounds = array<i64: 1, 128>}, {pipeline_mode = #tpu.pipeline_mode<synchronous>, transform_indices = @transform_3, window_bounds = array<i64: 1, 128>}, {transform_indices = @transform_4, window_bounds = array<i64: 256, 128>}]} {
    %c0 = arith.constant 0 : index
    %c0_0 = arith.constant 0 : index
    %0 = vector.load %arg1[%c0, %c0_0] : memref<256x4xbf16, #tpu.memory_space<vmem>>, vector<256x4xbf16>
    %c0_1 = arith.constant 0 : index
    %c0_2 = arith.constant 0 : index
    %1 = vector.load %arg2[%c0_1, %c0_2] : memref<4x128xbf16, #tpu.memory_space<vmem>>, vector<4x128xbf16>
    %cst = arith.constant dense<0.000000e+00> : vector<256x128xf32>
    %2 = tpu.matmul %0, %1, %cst {dimension_numbers = #tpu.dot_dimension_numbers<[1], [0], [0], [1], [0, 0, 1, 1], [], []>} : vector<256x4xbf16>, vector<4x128xbf16>, vector<256x128xf32> -> vector<256x128xf32>
    %c0_3 = arith.constant 0 : index
    %c0_4 = arith.constant 0 : index
    %3 = vector.load %arg3[%c0_3, %c0_4] : memref<1x128xf32, #tpu.memory_space<vmem>>, vector<1x128xf32>
    %4 = vector.broadcast %3 : vector<1x128xf32> to vector<256x128xf32>
    %5 = arith.mulf %2, %4 : vector<256x128xf32>
    %c0_5 = arith.constant 0 : index
    %c0_6 = arith.constant 0 : index
    %6 = vector.load %arg4[%c0_5, %c0_6] : memref<1x128xf32, #tpu.memory_space<vmem>>, vector<1x128xf32>
    %7 = vector.broadcast %6 : vector<1x128xf32> to vector<256x128xf32>
    %8 = arith.addf %5, %7 : vector<256x128xf32>
    %c0_7 = arith.constant 0 : index
    %c0_8 = arith.constant 0 : index
    %9 = vector.load %arg5[%c0_7, %c0_8] : memref<256x128xf32, #tpu.memory_space<vmem>>, vector<256x128xf32>
    tpu.vector_store %arg5[%c0_7, %c0_8], %8 {strides = array<i32>} : memref<256x128xf32, #tpu.memory_space<vmem>>, vector<256x128xf32>,
    return
  }
  func.func @transform_0(%arg0: i32) -> (i32, i32) {
    %c0_i32 = arith.constant 0 : i32
    %c0_i32_0 = arith.constant 0 : i32
    return %arg0, %c0_i32 : i32, i32
  }
  func.func @transform_1(%arg0: i32) -> (i32, i32) {
    %c0_i32 = arith.constant 0 : i32
    %c0_i32_0 = arith.constant 0 : i32
    %c0_i32_1 = arith.constant 0 : i32
    return %c0_i32, %c0_i32_0 : i32, i32
  }
  func.func @transform_2(%arg0: i32) -> (i32, i32) {
    %c0_i32 = arith.constant 0 : i32
    %c0_i32_0 = arith.constant 0 : i32
    %c0_i32_1 = arith.constant 0 : i32
    return %c0_i32, %c0_i32_0 : i32, i32
  }
  func.func @transform_3(%arg0: i32) -> (i32, i32) {
    %c0_i32 = arith.constant 0 : i32
    %c0_i32_0 = arith.constant 0 : i32
    %c0_i32_1 = arith.constant 0 : i32
    return %c0_i32, %c0_i32_0 : i32, i32
  }
  func.func @transform_4(%arg0: i32) -> (i32, i32) {
    %c0_i32 = arith.constant 0 : i32
    %c0_i32_0 = arith.constant 0 : i32
    return %arg0, %c0_i32 : i32, i32
  }
}

</mosaic_0001>

<bundles_post_ra>
// kernel: conv_projection_bypass.3
= control target key start
LH: loop header
LB: loop body
LE: loop exit
PB: predicated region body
PF: predicated region fallthrough
CT: control target
= control target key end

     0   :  { %s770_s15 = smov 0   ;;  %s918_s0 = inlined_call_operand.vmem [shape: bf16[512,4], index: 0, kind: input, shape index: {}]   ;;  %s919_s1 = inlined_call_operand.vmem [shape: bf16[4,128], index: 1, kind: input, shape index: {}]   ;;  %s920_s2 = inlined_call_operand.vmem [shape: f32[1,128], index: 2, kind: input, shape index: {}]   ;;  %s921_s3 = inlined_call_operand.vmem [shape: f32[1,128], index: 3, kind: input, shape index: {}]   ;;  %s922_s4 = inlined_call_operand.vmem [shape: f32[512,128], index: 4, kind: output, shape index: {}]  }
   0x1 LB: > { %s617_s16 = sadd.s32 4294967295, %s743_s15   ;;  %p621_p0 = scmp.ge.s32.totalorder %s743_s15, 1  ;;  %s743_s15 = sphi %s770_s15, %s14_s15  }
   0x2   : > { %p163_p1 = scmp.lt.s32.totalorder %s743_s15, 3 }
   0x4   : > { %p164_p2 = pnand %p621_p0, %p163_p1 }
   0x5   : > { %s622_s19 = sshll.u32 (!%p164_p2), %s617_s16, 5 }
   0x6   : > { %167 = sbr.rel (%p164_p2) target bundleno = 211 (0xd3), region = 36  ;;  %p190_p3 = scmp.lt.s32.totalorder (!%p164_p2), %s622_s19, 63 }
   0xb   : > { %v234_v0 = vld [vmem:[%s919_s1] sm:$0x3]  ;;  %vm364_vm0 = vcmask 1041408   ;;  %s924_s19 = smov (!%p190_p3, %s622_s19), 63  ;;  %vm315_vm1 = vcmask 31744  }
   0xc   : > { %v366_v1 = vsel %vm364_vm0, %v234_v0, 0  ;;  %s623_s20 = sshll.u32 %s924_s19, 2  ;;  %v806_v18 = vld [vmem:[%s920_s2] ss:$0 sm:$0xff]  ;;  %s625_s26 = sshll.u32 %s924_s19, 3 }
   0xd   : > { %375 = vmatpush.bf16.msra.mxu0 %v366_v1  ;;  %724 = vmatpush.bf16.msra.mxu1 %v366_v1  ;;  %s193_s23 = scalar_lea.vmem %s918_s0, %s623_s20  ;;  %v812_v19 = vld [vmem:[%s921_s3] ss:$0 sm:$0xff]  ;;  %s819_s5 = scalar_lea.vmem %s922_s4, %s625_s26 }
   0xe   : > { %725 = vmatpush.bf16.msra.mxu2 %v366_v1  ;;  %726 = vmatpush.bf16.msra.mxu3 %v366_v1  ;;  %v708_v2 = vld [vmem:[%s193_s23] sm:$0xff]  ;;  %v709_v6 = vld [vmem:[%s193_s23 + $0x8] sm:$0xff]  ;;  %v710_v10 = vld [vmem:[%s193_s23 + $0x10] sm:$0xff] }
   0xf   : > { %v712_v3 = vld [vmem:[%s193_s23 + $0x20] sm:$0xff]  ;;  %v713_v7 = vld [vmem:[%s193_s23 + $0x28] sm:$0xff]  ;;  %v714_v11 = vld [vmem:[%s193_s23 + $0x30] sm:$0xff] }
  0x10   : > { %v716_v4 = vld [vmem:[%s193_s23 + $0x40] sm:$0xff]  ;;  %690 = vmatmul.msk.bf16.vlgmr.msra.gmra.mxu0 %vm315_vm1, %v708_v2  ;;  %694 = vmatmul.msk.bf16.vlgmr.msra.gmra.mxu1 %vm315_vm1, %v712_v3  ;;  %v717_v8 = vld [vmem:[%s193_s23 + $0x48] sm:$0xff]  ;;  %v718_v12 = vld [vmem:[%s193_s23 + $0x50] sm:$0xff] }
  0x11   : > { %v720_v5 = vld [vmem:[%s193_s23 + $0x60] sm:$0xff]  ;;  %698 = vmatmul.msk.bf16.vlgmr.msra.gmra.mxu2 %vm315_vm1, %v716_v4  ;;  %v721_v9 = vld [vmem:[%s193_s23 + $0x68] sm:$0xff]  ;;  %v722_v13 = vld [vmem:[%s193_s23 + $0x70] sm:$0xff] }
  0x12   : > { %702 = vmatmul.msk.bf16.vlgmr.msra.gmra.mxu3 %vm315_vm1, %v720_v5  ;;  %v711_v14 = vld [vmem:[%s193_s23 + $0x18] sm:$0xff] }
  0x13   : > { %v715_v15 = vld [vmem:[%s193_s23 + $0x38] sm:$0xff] }
  0x14   : > { %v719_v16 = vld [vmem:[%s193_s23 + $0x58] sm:$0xff] }
  0x15   : > { %v723_v17 = vld [vmem:[%s193_s23 + $0x78] sm:$0xff] }
  0x20   : > { %691 = vmatmul.msk.bf16.gmra.mxu0 %vm315_vm1, %v709_v6  ;;  %695 = vmatmul.msk.bf16.gmra.mxu1 %vm315_vm1, %v713_v7 }
  0x21   : > { %699 = vmatmul.msk.bf16.gmra.mxu2 %vm315_vm1, %v717_v8 }
  0x22   : > { %703 = vmatmul.msk.bf16.gmra.mxu3 %vm315_vm1, %v721_v9 }
  0x30   : > { %692 = vmatmul.msk.bf16.gmra.mxu0 %vm315_vm1, %v710_v10  ;;  %696 = vmatmul.msk.bf16.gmra.mxu1 %vm315_vm1, %v714_v11 }
  0x31   : > { %700 = vmatmul.msk.bf16.gmra.mxu2 %vm315_vm1, %v718_v12 }
  0x32   : > { %704 = vmatmul.msk.bf16.gmra.mxu3 %vm315_vm1, %v722_v13 }
  0x40   : > { %693 = vmatmul.msk.bf16.gmra.mxu0 %vm315_vm1, %v711_v14  ;;  %697 = vmatmul.msk.bf16.gmra.mxu1 %vm315_vm1, %v715_v15 }
  0x41   : > { %701 = vmatmul.msk.bf16.gmra.mxu2 %vm315_vm1, %v719_v16 }
  0x42   : > { %705 = vmatmul.msk.bf16.gmra.mxu3 %vm315_vm1, %v723_v17 }
  0x8d   : > { %v377_v20 = vpop.f32.mrf.mxu0  ;;  %v397_v21 = vpop.f32.mrf.mxu1 }
  0x8e   : > { %v461_v22 = vmul.f32 %v806_v18, %v377_v20  ;;  %v469_v23 = vmul.f32 %v806_v18, %v397_v21 }
  0x90   : > { %v497_v24 = vadd.f32 %v812_v19, %v461_v22  ;;  %v505_v25 = vadd.f32 %v812_v19, %v469_v23 }
  0x92   : > { %529 = vst [vmem:[%s819_s5] sm:$0xff] %v497_v24 }
  0x93   : > { %537 = vst [vmem:[%s819_s5 + $0x40] sm:$0xff] %v505_v25 }
  0x94   : > { %v417_v26 = vpop.f32.mrf.mxu2 }
  0x95   : > { %v437_v27 = vpop.f32.mrf.mxu3  ;;  %v477_v28 = vmul.f32 %v806_v18, %v417_v26  ;;  %v379_v30 = vpop.f32.mrf.mxu0 }
  0x96   : > { %v485_v29 = vmul.f32 %v806_v18, %v437_v27  ;;  %v399_v31 = vpop.f32.mrf.mxu1  ;;  %v462_v32 = vmul.f32 %v806_v18, %v379_v30 }
  0x97   : > { %v470_v33 = vmul.f32 %v806_v18, %v399_v31  ;;  %v513_v34 = vadd.f32 %v812_v19, %v477_v28 }
  0x98   : > { %v521_v35 = vadd.f32 %v812_v19, %v485_v29  ;;  %v498_v36 = vadd.f32 %v812_v19, %v462_v32 }
  0x99   : > { %v506_v37 = vadd.f32 %v812_v19, %v470_v33  ;;  %545 = vst [vmem:[%s819_s5 + $0x80] sm:$0xff] %v513_v34 }
  0x9a   : > { %553 = vst [vmem:[%s819_s5 + $0xc0] sm:$0xff] %v521_v35 }
  0x9b   : > { %530 = vst [vmem:[%s819_s5 + $0x8] sm:$0xff] %v498_v36 }
  0x9c   : > { %538 = vst [vmem:[%s819_s5 + $0x48] sm:$0xff] %v506_v37  ;;  %v419_v38 = vpop.f32.mrf.mxu2 }
  0x9d   : > { %v439_v39 = vpop.f32.mrf.mxu3  ;;  %v478_v40 = vmul.f32 %v806_v18, %v419_v38  ;;  %v382_v42 = vpop.f32.mrf.mxu0 }
  0x9e   : > { %v486_v41 = vmul.f32 %v806_v18, %v439_v39  ;;  %v402_v43 = vpop.f32.mrf.mxu1  ;;  %v463_v44 = vmul.f32 %v806_v18, %v382_v42 }
  0x9f   : > { %v471_v45 = vmul.f32 %v806_v18, %v402_v43  ;;  %v514_v46 = vadd.f32 %v812_v19, %v478_v40 }
  0xa0   : > { %v522_v47 = vadd.f32 %v812_v19, %v486_v41  ;;  %v499_v48 = vadd.f32 %v812_v19, %v463_v44 }
  0xa1   : > { %v507_v49 = vadd.f32 %v812_v19, %v471_v45  ;;  %546 = vst [vmem:[%s819_s5 + $0x88] sm:$0xff] %v514_v46 }
  0xa2   : > { %554 = vst [vmem:[%s819_s5 + $0xc8] sm:$0xff] %v522_v47 }
  0xa3   : > { %531 = vst [vmem:[%s819_s5 + $0x10] sm:$0xff] %v499_v48 }
  0xa4   : > { %539 = vst [vmem:[%s819_s5 + $0x50] sm:$0xff] %v507_v49  ;;  %v422_v50 = vpop.f32.mrf.mxu2 }
  0xa5   : > { %v442_v51 = vpop.f32.mrf.mxu3  ;;  %v479_v52 = vmul.f32 %v806_v18, %v422_v50  ;;  %v384_v54 = vpop.f32.mrf.mxu0 }
  0xa6   : > { %v487_v53 = vmul.f32 %v806_v18, %v442_v51  ;;  %v404_v55 = vpop.f32.mrf.mxu1  ;;  %v464_v56 = vmul.f32 %v806_v18, %v384_v54 }
  0xa7   : > { %v472_v57 = vmul.f32 %v806_v18, %v404_v55  ;;  %v515_v58 = vadd.f32 %v812_v19, %v479_v52 }
  0xa8   : > { %v523_v59 = vadd.f32 %v812_v19, %v487_v53  ;;  %v500_v60 = vadd.f32 %v812_v19, %v464_v56 }
  0xa9   : > { %v508_v61 = vadd.f32 %v812_v19, %v472_v57  ;;  %547 = vst [vmem:[%s819_s5 + $0x90] sm:$0xff] %v515_v58 }
  0xaa   : > { %555 = vst [vmem:[%s819_s5 + $0xd0] sm:$0xff] %v523_v59 }
  0xab   : > { %532 = vst [vmem:[%s819_s5 + $0x18] sm:$0xff] %v500_v60 }
  0xac   : > { %540 = vst [vmem:[%s819_s5 + $0x58] sm:$0xff] %v508_v61  ;;  %v424_v62 = vpop.f32.mrf.mxu2 }
  0xad   : > { %v444_v63 = vpop.f32.mrf.mxu3  ;;  %v480_v0 = vmul.f32 %v806_v18, %v424_v62  ;;  %v387_v2 = vpop.f32.mrf.mxu0 }
  0xae   : > { %v488_v1 = vmul.f32 %v806_v18, %v444_v63  ;;  %v407_v3 = vpop.f32.mrf.mxu1  ;;  %v465_v4 = vmul.f32 %v806_v18, %v387_v2 }
  0xaf   : > { %v473_v5 = vmul.f32 %v806_v18, %v407_v3  ;;  %v516_v6 = vadd.f32 %v812_v19, %v480_v0 }
  0xb0   : > { %v524_v7 = vadd.f32 %v812_v19, %v488_v1  ;;  %v501_v8 = vadd.f32 %v812_v19, %v465_v4 }
  0xb1   : > { %v509_v9 = vadd.f32 %v812_v19, %v473_v5  ;;  %548 = vst [vmem:[%s819_s5 + $0x98] sm:$0xff] %v516_v6 }
  0xb2   : > { %556 = vst [vmem:[%s819_s5 + $0xd8] sm:$0xff] %v524_v7 }
  0xb3   : > { %533 = vst [vmem:[%s819_s5 + $0x20] sm:$0xff] %v501_v8 }
  0xb4   : > { %541 = vst [vmem:[%s819_s5 + $0x60] sm:$0xff] %v509_v9  ;;  %v427_v10 = vpop.f32.mrf.mxu2 }
  0xb5   : > { %v447_v11 = vpop.f32.mrf.mxu3  ;;  %v481_v12 = vmul.f32 %v806_v18, %v427_v10  ;;  %v389_v14 = vpop.f32.mrf.mxu0 }
  0xb6   : > { %v489_v13 = vmul.f32 %v806_v18, %v447_v11  ;;  %v409_v15 = vpop.f32.mrf.mxu1  ;;  %v466_v16 = vmul.f32 %v806_v18, %v389_v14 }
  0xb7   : > { %v474_v17 = vmul.f32 %v806_v18, %v409_v15  ;;  %v517_v20 = vadd.f32 %v812_v19, %v481_v12 }
  0xb8   : > { %v525_v21 = vadd.f32 %v812_v19, %v489_v13  ;;  %v502_v22 = vadd.f32 %v812_v19, %v466_v16 }
  0xb9   : > { %v510_v23 = vadd.f32 %v812_v19, %v474_v17  ;;  %549 = vst [vmem:[%s819_s5 + $0xa0] sm:$0xff] %v517_v20 }
  0xba   : > { %557 = vst [vmem:[%s819_s5 + $0xe0] sm:$0xff] %v525_v21 }
  0xbb   : > { %534 = vst [vmem:[%s819_s5 + $0x28] sm:$0xff] %v502_v22 }
  0xbc   : > { %542 = vst [vmem:[%s819_s5 + $0x68] sm:$0xff] %v510_v23  ;;  %v429_v24 = vpop.f32.mrf.mxu2 }
  0xbd   : > { %v449_v25 = vpop.f32.mrf.mxu3  ;;  %v482_v26 = vmul.f32 %v806_v18, %v429_v24  ;;  %v392_v28 = vpop.f32.mrf.mxu0 }
  0xbe   : > { %v490_v27 = vmul.f32 %v806_v18, %v449_v25  ;;  %v412_v29 = vpop.f32.mrf.mxu1  ;;  %v467_v30 = vmul.f32 %v806_v18, %v392_v28 }
  0xbf   : > { %v475_v31 = vmul.f32 %v806_v18, %v412_v29  ;;  %v518_v32 = vadd.f32 %v812_v19, %v482_v26 }
  0xc0   : > { %v526_v33 = vadd.f32 %v812_v19, %v490_v27  ;;  %v503_v34 = vadd.f32 %v812_v19, %v467_v30 }
  0xc1   : > { %v511_v35 = vadd.f32 %v812_v19, %v475_v31  ;;  %550 = vst [vmem:[%s819_s5 + $0xa8] sm:$0xff] %v518_v32 }
  0xc2   : > { %558 = vst [vmem:[%s819_s5 + $0xe8] sm:$0xff] %v526_v33 }
  0xc3   : > { %535 = vst [vmem:[%s819_s5 + $0x30] sm:$0xff] %v503_v34 }
  0xc4   : > { %543 = vst [vmem:[%s819_s5 + $0x70] sm:$0xff] %v511_v35  ;;  %v432_v36 = vpop.f32.mrf.mxu2 }
  0xc5   : > { %v452_v37 = vpop.f32.mrf.mxu3  ;;  %v483_v38 = vmul.f32 %v806_v18, %v432_v36  ;;  %v394_v40 = vpop.f32.mrf.mxu0 }
  0xc6   : > { %v491_v39 = vmul.f32 %v806_v18, %v452_v37  ;;  %v414_v41 = vpop.f32.mrf.mxu1  ;;  %v468_v42 = vmul.f32 %v806_v18, %v394_v40 }
  0xc7   : > { %v476_v43 = vmul.f32 %v806_v18, %v414_v41  ;;  %v519_v44 = vadd.f32 %v812_v19, %v483_v38 }
  0xc8   : > { %v527_v45 = vadd.f32 %v812_v19, %v491_v39  ;;  %v504_v46 = vadd.f32 %v812_v19, %v468_v42 }
  0xc9   : > { %v512_v47 = vadd.f32 %v812_v19, %v476_v43  ;;  %551 = vst [vmem:[%s819_s5 + $0xb0] sm:$0xff] %v519_v44 }
  0xca   : > { %559 = vst [vmem:[%s819_s5 + $0xf0] sm:$0xff] %v527_v45 }
  0xcb   : > { %536 = vst [vmem:[%s819_s5 + $0x38] sm:$0xff] %v504_v46 }
  0xcc   : > { %544 = vst [vmem:[%s819_s5 + $0x78] sm:$0xff] %v512_v47  ;;  %v434_v48 = vpop.f32.mrf.mxu2 }
  0xcd   : > { %v454_v49 = vpop.f32.mrf.mxu3  ;;  %v484_v50 = vmul.f32 %v806_v18, %v434_v48 }
  0xce   : > { %v492_v51 = vmul.f32 %v806_v18, %v454_v49 }
  0xcf   : > { %v520_v52 = vadd.f32 %v812_v19, %v484_v50 }
  0xd0   : > { %v528_v53 = vadd.f32 %v812_v19, %v492_v51 }
  0xd1   : > { %552 = vst [vmem:[%s819_s5 + $0xb8] sm:$0xff] %v520_v52 }
  0xd2   : > { %560 = vst [vmem:[%s819_s5 + $0xf8] sm:$0xff] %v528_v53 }
  0xd3 PF: > { %s14_s15 = sadd.s32 1, %s743_s15  }
  0xd4   : > { %p11_p4 = scmp.ge.s32.totalorder %s14_s15, 4  }
  0xd6   :  { %13 = sbr.rel (!%p11_p4) target bundleno = 1 (0x1), region = 66 }

// kernel: conv_projection_bypass.2
= control target key start
LH: loop header
LB: loop body
LE: loop exit
PB: predicated region body
PF: predicated region fallthrough
CT: control target
= control target key end

     0   :  { %s770_s9 = smov 0   ;;  %s772_s10 = smov 0   ;;  %s872_s0 = inlined_call_operand.vmem [shape: bf16[512,4], index: 0, kind: input, shape index: {}]   ;;  %s873_s1 = inlined_call_operand.vmem [shape: bf16[4,128], index: 1, kind: input, shape index: {}]   ;;  %s874_s2 = inlined_call_operand.vmem [shape: f32[2,2,128], index: 2, kind: output, shape index: {}]  }
   0x1   :  { %s774_s11 = smov 0  }
   0x2 LB: > { %s24_s12 = sadd.s32 1, %s748_s10  ;;  %p600_p0 = scmp.ge.s32.totalorder %s752_s11, 1  ;;  %s752_s11 = sphi %s774_s11, %s12_s11   ;;  %s748_s10 = sphi %s772_s10, %s876_s10   ;;  %s744_s9 = sphi %s770_s9, %s875_s9  }
   0x3   : > { %p26_p1 = scmp.ge.s32.totalorder %s24_s12, 2  ;;  %p129_p2 = scmp.lt.s32.totalorder %s752_s11, 3 }
   0x5   : > { %s878_s12 = smov (%p26_p1, %s24_s12), 0  ;;  %p130_p3 = pnand %p600_p0, %p129_p2 }
   0x6   : > { %s601_s15 = sshll.u32 (!%p130_p3), %s744_s9, 5  ;;  %p159_p5 = scmp.lt.s32.totalorder (!%p130_p3), %s744_s9, 1 }
   0x7   : > { %133 = sbr.rel (%p130_p3) target bundleno = 267 (0x10b), region = 28  ;;  %p153_p4 = scmp.lt.s32.totalorder (!%p130_p3), %s601_s15, 63 }
   0xc   : > { %v196_v0 = vld [vmem:[%s873_s1] sm:$0x3]  ;;  %vm326_vm0 = vcmask 1041408   ;;  %s880_s15 = smov (!%p153_p4, %s601_s15), 63  ;;  %vm277_vm1 = vcmask 31744   ;;  %s882_s9 = smov (!%p159_p5, %s744_s9), 1 }
   0xd   : > { %v328_v1 = vsel %vm326_vm0, %v196_v0, 0  ;;  %s602_s16 = sshll.u32 %s880_s15, 2  ;;  %s603_s20 = sshll.u32 %s882_s9, 1  ;;  %vm531_vm2 = vcmask 1040384  }
   0xe   : > { %337 = vmatpush.bf16.msra.mxu0 %v328_v1  ;;  %702 = vmatpush.bf16.msra.mxu1 %v328_v1  ;;  %s156_s19 = scalar_lea.vmem %s872_s0, %s602_s16  ;;  %s834_s23 = scalar_lea.vmem %s874_s2, %s603_s20 }
   0xf   : > { %703 = vmatpush.bf16.msra.mxu2 %v328_v1  ;;  %704 = vmatpush.bf16.msra.mxu3 %v328_v1  ;;  %v686_v2 = vld [vmem:[%s156_s19] sm:$0xff]  ;;  %v687_v6 = vld [vmem:[%s156_s19 + $0x8] sm:$0xff]  ;;  %v688_v10 = vld [vmem:[%s156_s19 + $0x10] sm:$0xff] }
  0x10   : > { %v690_v3 = vld [vmem:[%s156_s19 + $0x20] sm:$0xff]  ;;  %v691_v7 = vld [vmem:[%s156_s19 + $0x28] sm:$0xff]  ;;  %v692_v11 = vld [vmem:[%s156_s19 + $0x30] sm:$0xff] }
  0x11   : > { %v694_v4 = vld [vmem:[%s156_s19 + $0x40] sm:$0xff]  ;;  %668 = vmatmul.msk.bf16.vlgmr.msra.gmra.mxu0 %vm277_vm1, %v686_v2  ;;  %672 = vmatmul.msk.bf16.vlgmr.msra.gmra.mxu1 %vm277_vm1, %v690_v3  ;;  %v695_v8 = vld [vmem:[%s156_s19 + $0x48] sm:$0xff]  ;;  %v696_v12 = vld [vmem:[%s156_s19 + $0x50] sm:$0xff] }
  0x12   : > { %v698_v5 = vld [vmem:[%s156_s19 + $0x60] sm:$0xff]  ;;  %676 = vmatmul.msk.bf16.vlgmr.msra.gmra.mxu2 %vm277_vm1, %v694_v4  ;;  %v699_v9 = vld [vmem:[%s156_s19 + $0x68] sm:$0xff]  ;;  %v700_v13 = vld [vmem:[%s156_s19 + $0x70] sm:$0xff] }
  0x13   : > { %680 = vmatmul.msk.bf16.vlgmr.msra.gmra.mxu3 %vm277_vm1, %v698_v5  ;;  %v689_v14 = vld [vmem:[%s156_s19 + $0x18] sm:$0xff] }
  0x14   : > { %v693_v15 = vld [vmem:[%s156_s19 + $0x38] sm:$0xff] }
  0x15   : > { %v697_v16 = vld [vmem:[%s156_s19 + $0x58] sm:$0xff] }
  0x16   : > { %v701_v17 = vld [vmem:[%s156_s19 + $0x78] sm:$0xff] }
  0x21   : > { %669 = vmatmul.msk.bf16.gmra.mxu0 %vm277_vm1, %v687_v6  ;;  %673 = vmatmul.msk.bf16.gmra.mxu1 %vm277_vm1, %v691_v7 }
  0x22   : > { %677 = vmatmul.msk.bf16.gmra.mxu2 %vm277_vm1, %v695_v8 }
  0x23   : > { %681 = vmatmul.msk.bf16.gmra.mxu3 %vm277_vm1, %v699_v9 }
  0x31   : > { %670 = vmatmul.msk.bf16.gmra.mxu0 %vm277_vm1, %v688_v10  ;;  %674 = vmatmul.msk.bf16.gmra.mxu1 %vm277_vm1, %v692_v11 }
  0x32   : > { %678 = vmatmul.msk.bf16.gmra.mxu2 %vm277_vm1, %v696_v12 }
  0x33   : > { %682 = vmatmul.msk.bf16.gmra.mxu3 %vm277_vm1, %v700_v13 }
  0x41   : > { %671 = vmatmul.msk.bf16.gmra.mxu0 %vm277_vm1, %v689_v14  ;;  %675 = vmatmul.msk.bf16.gmra.mxu1 %vm277_vm1, %v693_v15 }
  0x42   : > { %679 = vmatmul.msk.bf16.gmra.mxu2 %vm277_vm1, %v697_v16 }
  0x43   : > { %683 = vmatmul.msk.bf16.gmra.mxu3 %vm277_vm1, %v701_v17 }
  0x8e   : > { %v339_v18 = vpop.f32.mrf.mxu0  ;;  %v359_v19 = vpop.f32.mrf.mxu1 }
  0x8f   : > { %v461_v35 = vmul.f32 %v339_v18, %v339_v18  ;;  %v469_v61 = vmul.f32 %v359_v19, %v359_v19 }
  0x95   : > { %v813_v23 = vpop.f32.mrf.mxu2 }
  0x96   : > { %v341_v20 = vpop.f32.mrf.mxu0  ;;  %v361_v21 = vpop.f32.mrf.mxu1 }
  0x97   : > { %v817_v29 = vpop.f32.mrf.mxu3  ;;  %v462_v34 = vmul.f32 %v341_v20, %v341_v20  ;;  %v424_v36 = vadd.f32 %v341_v20, %v339_v18  ;;  %v470_v1 = vmul.f32 %v361_v21, %v361_v21 }
  0x99   : > { %v493_v39 = vadd.f32 %v462_v34, %v461_v35 }
  0x9d   : > { %v815_v26 = vpop.f32.mrf.mxu2 }
  0x9e   : > { %v344_v22 = vpop.f32.mrf.mxu0  ;;  %v364_v24 = vpop.f32.mrf.mxu1 }
  0x9f   : > { %v821_v33 = vpop.f32.mrf.mxu3  ;;  %v463_v37 = vmul.f32 %v344_v22, %v344_v22  ;;  %v425_v40 = vadd.f32 %v424_v36, %v344_v22  ;;  %v471_v5 = vmul.f32 %v364_v24, %v364_v24  ;;  %v478_v36 = vmul.f32 %v815_v26, %v815_v26 }
  0xa1   : > { %v494_v43 = vadd.f32 %v493_v39, %v463_v37 }
  0xa5   : > { %v819_v30 = vpop.f32.mrf.mxu2 }
  0xa6   : > { %v346_v25 = vpop.f32.mrf.mxu0  ;;  %v366_v27 = vpop.f32.mrf.mxu1 }
  0xa7   : > { %v464_v41 = vmul.f32 %v346_v25, %v346_v25  ;;  %v426_v44 = vadd.f32 %v425_v40, %v346_v25  ;;  %v825_v50 = vpop.f32.mrf.mxu3  ;;  %v472_v8 = vmul.f32 %v366_v27, %v366_v27  ;;  %v479_v40 = vmul.f32 %v819_v30, %v819_v30 }
  0xa9   : > { %v495_v47 = vadd.f32 %v494_v43, %v464_v41 }
  0xad   : > { %v823_v38 = vpop.f32.mrf.mxu2 }
  0xae   : > { %v349_v28 = vpop.f32.mrf.mxu0  ;;  %v369_v32 = vpop.f32.mrf.mxu1  ;;  %v480_v43 = vmul.f32 %v823_v38, %v823_v38 }
  0xaf   : > { %v465_v45 = vmul.f32 %v349_v28, %v349_v28  ;;  %v427_v48 = vadd.f32 %v426_v44, %v349_v28  ;;  %v828_v4 = vpop.f32.mrf.mxu3  ;;  %v473_v12 = vmul.f32 %v369_v32, %v369_v32  ;;  %v754_v28 = vmov 0.0  }
  0xb0   : > { %423 = vst [vmem:[%s834_s23] sm:$0x3] %v754_v28 }
  0xb1   : > { %v496_v51 = vadd.f32 %v495_v47, %v465_v45 }
  0xb5   : > { %v389_v57 = vpop.f32.mrf.mxu2 }
  0xb6   : > { %v351_v31 = vpop.f32.mrf.mxu0  ;;  %v371_v46 = vpop.f32.mrf.mxu1 }
  0xb7   : > { %v466_v49 = vmul.f32 %v351_v31, %v351_v31  ;;  %v428_v52 = vadd.f32 %v427_v48, %v351_v31  ;;  %v474_v15 = vmul.f32 %v371_v46, %v371_v46  ;;  %v409_v22 = vpop.f32.mrf.mxu3  ;;  %v477_v31 = vmul.f32 %v813_v23, %v813_v23 }
  0xb9   : > { %v497_v54 = vadd.f32 %v496_v51, %v466_v49 }
  0xbd   : > { %v391_v11 = vpop.f32.mrf.mxu2 }
  0xbe   : > { %v354_v42 = vpop.f32.mrf.mxu0  ;;  %v374_v0 = vpop.f32.mrf.mxu1  ;;  %v482_v51 = vmul.f32 %v391_v11, %v391_v11 }
  0xbf   : > { %v467_v53 = vmul.f32 %v354_v42, %v354_v42  ;;  %v429_v55 = vadd.f32 %v428_v52, %v354_v42  ;;  %v475_v20 = vmul.f32 %v374_v0, %v374_v0  ;;  %v411_v45 = vpop.f32.mrf.mxu3 }
  0xc1   : > { %v498_v58 = vadd.f32 %v497_v54, %v467_v53 }
  0xc5   : > { %v394_v35 = vpop.f32.mrf.mxu2 }
  0xc6   : > { %v356_v56 = vpop.f32.mrf.mxu0  ;;  %v376_v18 = vpop.f32.mrf.mxu1 }
  0xc7   : > { %v430_v59 = vadd.f32 %v429_v55, %v356_v56  ;;  %v468_v60 = vmul.f32 %v356_v56, %v356_v56  ;;  %v483_v55 = vmul.f32 %v394_v35, %v394_v35 }
  0xc9   : > { %v431_v62 = vadd.f32 %v430_v59, %v359_v19  ;;  %v499_v63 = vadd.f32 %v498_v58, %v468_v60  ;;  %v485_v59 = vmul.f32 %v817_v29, %v817_v29 }
  0xcb   : > { %v432_v2 = vadd.f32 %v431_v62, %v361_v21  ;;  %v500_v3 = vadd.f32 %v499_v63, %v469_v61  ;;  %v414_v61 = vpop.f32.mrf.mxu3 }
  0xcd   : > { %v433_v6 = vadd.f32 %v432_v2, %v364_v24  ;;  %v501_v7 = vadd.f32 %v500_v3, %v470_v1  ;;  %v396_v52 = vpop.f32.mrf.mxu2  ;;  %v488_v3 = vmul.f32 %v828_v4, %v828_v4 }
  0xce   : > { %v484_v58 = vmul.f32 %v396_v52, %v396_v52 }
  0xcf   : > { %v502_v9 = vadd.f32 %v501_v7, %v471_v5  ;;  %v434_v10 = vadd.f32 %v433_v6, %v366_v27  ;;  %v476_v27 = vmul.f32 %v376_v18, %v376_v18  ;;  %v489_v6 = vmul.f32 %v409_v22, %v409_v22 }
  0xd1   : > { %v435_v13 = vadd.f32 %v434_v10, %v369_v32  ;;  %v503_v14 = vadd.f32 %v502_v9, %v472_v8  ;;  %v490_v10 = vmul.f32 %v411_v45, %v411_v45 }
  0xd3   : > { %v436_v16 = vadd.f32 %v435_v13, %v371_v46  ;;  %v504_v17 = vadd.f32 %v503_v14, %v473_v12  ;;  %v481_v46 = vmul.f32 %v389_v57, %v389_v57  ;;  %v491_v14 = vmul.f32 %v414_v61, %v414_v61 }
  0xd5   : > { %v437_v19 = vadd.f32 %v436_v16, %v374_v0  ;;  %v505_v21 = vadd.f32 %v504_v17, %v474_v15  ;;  %v487_v0 = vmul.f32 %v825_v50, %v825_v50 }
  0xd7   : > { %v506_v24 = vadd.f32 %v505_v21, %v475_v20  ;;  %v438_v25 = vadd.f32 %v437_v19, %v376_v18 }
  0xd9   : > { %v439_v32 = vadd.f32 %v438_v25, %v813_v23  ;;  %v507_v34 = vadd.f32 %v506_v24, %v476_v27 }
  0xdb   : > { %v440_v37 = vadd.f32 %v439_v32, %v815_v26  ;;  %v508_v39 = vadd.f32 %v507_v34, %v477_v31  ;;  %v530_v34 = vld [vmem:[%s834_s23] sm:$0x3] }
  0xdd   : > { %v441_v41 = vadd.f32 %v440_v37, %v819_v30  ;;  %v509_v42 = vadd.f32 %v508_v39, %v478_v36 }
  0xdf   : > { %v510_v44 = vadd.f32 %v509_v42, %v479_v40  ;;  %v442_v23 = vadd.f32 %v441_v41, %v823_v38 }
  0xe1   : > { %v443_v47 = vadd.f32 %v442_v23, %v389_v57  ;;  %v511_v48 = vadd.f32 %v510_v44, %v480_v43  ;;  %v486_v57 = vmul.f32 %v821_v33, %v821_v33 }
  0xe3   : > { %v444_v49 = vadd.f32 %v443_v47, %v391_v11  ;;  %v512_v26 = vadd.f32 %v511_v48, %v481_v46 }
  0xe5   : > { %v513_v53 = vadd.f32 %v512_v26, %v482_v51  ;;  %v445_v54 = vadd.f32 %v444_v49, %v394_v35 }
  0xe7   : > { %v514_v56 = vadd.f32 %v513_v53, %v483_v55  ;;  %v446_v30 = vadd.f32 %v445_v54, %v396_v52 }
  0xe9   : > { %v447_v60 = vadd.f32 %v446_v30, %v817_v29  ;;  %v515_v38 = vadd.f32 %v514_v56, %v484_v58 }
  0xeb   : > { %v448_v62 = vadd.f32 %v447_v60, %v821_v33  ;;  %v516_v63 = vadd.f32 %v515_v38, %v485_v59  ;;  %v416_v33 = vpop.f32.mrf.mxu3 }
  0xed   : > { %v449_v1 = vadd.f32 %v448_v62, %v825_v50  ;;  %v517_v2 = vadd.f32 %v516_v63, %v486_v57  ;;  %v492_v50 = vmul.f32 %v416_v33, %v416_v33 }
  0xef   : > { %v518_v5 = vadd.f32 %v517_v2, %v487_v0  ;;  %v450_v29 = vadd.f32 %v449_v1, %v828_v4 }
  0xf1   : > { %v451_v7 = vadd.f32 %v450_v29, %v409_v22  ;;  %v519_v8 = vadd.f32 %v518_v5, %v488_v3 }
  0xf3   : > { %v452_v9 = vadd.f32 %v451_v7, %v411_v45  ;;  %v520_v11 = vadd.f32 %v519_v8, %v489_v6 }
  0xf5   : > { %v521_v12 = vadd.f32 %v520_v11, %v490_v10  ;;  %v453_v13 = vadd.f32 %v452_v9, %v414_v61 }
  0xf7   : > { %v522_v15 = vadd.f32 %v521_v12, %v491_v14  ;;  %v454_v16 = vadd.f32 %v453_v13, %v416_v33 }
  0xf9   : > { %v455_v17 = vrot.slane %v454_v16, 4  ;;  %v523_v18 = vadd.f32 %v522_v15, %v492_v50 }
  0xfb   : > { %v456_v19 = vadd.f32 %v455_v17, %v454_v16  ;;  %v524_v20 = vrot.slane %v523_v18, 4 }
  0xfd   : > { %v457_v4 = vrot.slane %v456_v19, 2  ;;  %v525_v21 = vadd.f32 %v524_v20, %v523_v18 }
  0xff   : > { %v458_v22 = vadd.f32 %v457_v4, %v456_v19  ;;  %v526_v24 = vrot.slane %v525_v21, 2 }
 0x101   : > { %v459_v25 = vrot.slane %v458_v22, 1  ;;  %v527_v27 = vadd.f32 %v526_v24, %v525_v21 }
 0x103   : > { %v528_v28 = vrot.slane %v527_v27, 1  ;;  %v460_v31 = vadd.f32 %v459_v25, %v458_v22 }
 0x105   : > { %v529_v32 = vadd.f32 %v528_v28, %v527_v27 }
 0x107   : > { %v532_v35 = vsel %vm531_vm2, %v460_v31, %v529_v32 }
 0x108   : > { %v533_v36 = vadd.f32 %v532_v35, %v530_v34 }
 0x10a   : > { %534 = vst [vmem:[%s834_s23] sm:$0x3] %v533_v36 }
 0x10b PF: > { %s12_s11 = sadd.s32 1, %s752_s11   ;;  %s875_s9 = smov %s748_s10 }
 0x10c   : > { %p9_p6 = scmp.ge.s32.totalorder %s12_s11, 4   ;;  %s876_s10 = smov %s878_s12 }
 0x10e   :  { %11 = sbr.rel (!%p9_p6) target bundleno = 2 (0x2), region = 62 }

</bundles_post_ra>
